<compile_context>
chip_gen: v7x
topology: tpu7x:2x2x1
jax: 0.10.0
libtpu: 0.0.40
codegen_flags: <defaults>
</compile_context>

<pallas_src>
import math
import functools

import jax
import jax.numpy as jnp
from jax import lax
from jax.experimental import pallas as pl
from jax.experimental.pallas import tpu as pltpu


# ----------------------------- config ---------------------------------------
class Config:
    num_hiddens = 32
    num_heads = 2
    attention_probs_dropout_prob = 0.0   # dropout disabled -> deterministic
    attention_window = 4
    attention_dilation = 1
    attention_mode = "sliding_chunks"
    autoregressive = False


# --------------------------- small helpers -----------------------------------
def _round_up(x, m):
    return ((x + m - 1) // m) * m


def _pick_tile(n, cap):
    """Largest divisor of n that is a multiple of 8 and <= cap (else n)."""
    cap = max(8, min(n, cap))
    best = None
    for t in range(8, cap + 1, 8):
        if n % t == 0:
            best = t
    return best if best is not None else n


def _pick_q_tile(seq_len, w):
    # Tie tq to the window / MXU width: the softmax covers a 3*tq key window,
    # so tq >> w is wasted MXU/VALU/EUP work; tq >= 128 keeps the MXU M dim full.
    t = _pick_tile(seq_len, max(128, _round_up(max(w, 1), 128)))
    if t < w and 3 * t < seq_len:
        # A 3-tile window would not cover the +-w band; fall back to one tile
        # covering the whole sequence (window == full sequence, always valid).
        return seq_len
    return t


def _compiler_params(semantics, block_bytes):
    # Re-derive the scoped-VMEM limit from the per-step footprint so one code
    # path fits v5e (16 MiB default scoped) / v6e (32 MiB) / v7x (64 MiB phys).
    est = 2 * block_bytes + (4 << 20)          # double-buffered operands + slack
    vmem = int(min(max(est, 32 << 20), 100 << 20))
    return pltpu.CompilerParams(dimension_semantics=semantics,
                                vmem_limit_bytes=vmem)


# ------------------------- fused QKV projection ------------------------------
def _qkv_kernel(x_ref, w_ref, b_ref, q_ref, k_ref, v_ref, *, e):
    # bf16 MXU matmul with f32 accumulation; 1/sqrt(head_dim) is already folded
    # into the (pre-transposed) query weights/bias, so no extra scale op here.
    x = x_ref[...].astype(jnp.bfloat16)
    y = jnp.dot(x, w_ref[...], preferred_element_type=jnp.float32) + b_ref[...]
    q_ref[...] = y[:, :e].astype(q_ref.dtype)
    k_ref[...] = y[:, e:2 * e].astype(k_ref.dtype)
    v_ref[...] = y[:, 2 * e:].astype(v_ref.dtype)


def fused_qkv_projection(x, w_qkv, b_qkv, *, ts=None):
    """x: (bsz, S, E) f32;  w_qkv: (E, 3E) bf16;  b_qkv: (1, 3E) f32.

    Returns q, k, v, each (bsz, S, E) bf16, in the natural token-major layout
    (no head-split relayout pass)."""
    bsz, s, e = x.shape
    out_dim = w_qkv.shape[1]
    if ts is None:
        ts = _pick_tile(s, 512)
    assert s % ts == 0

    block_bytes = (ts * e * 4) + (e * out_dim * 2) + (out_dim * 4) \
        + 3 * (ts * e * 2)

    row_spec_in = pl.BlockSpec((None, ts, e), lambda b, r: (b, r, 0))
    row_spec_out = pl.BlockSpec((None, ts, e), lambda b, r: (b, r, 0))

    q, k, v = pl.pallas_call(
        functools.partial(_qkv_kernel, e=e),
        out_shape=tuple(jax.ShapeDtypeStruct((bsz, s, e), jnp.bfloat16)
                        for _ in range(3)),
        grid=(bsz, s // ts),
        in_specs=[row_spec_in,
                  pl.BlockSpec((e, out_dim), lambda b, r: (0, 0)),
                  pl.BlockSpec((1, out_dim), lambda b, r: (0, 0))],
        out_specs=(row_spec_out, row_spec_out, row_spec_out),
        compiler_params=_compiler_params(("parallel", "parallel"), block_bytes),
    )(x, w_qkv, b_qkv)
    return q, k, v


# ----------------------- banded sliding-window attention ---------------------
def _banded_attn_kernel(q_ref, k_ref, v_ref, o_ref, *,
                        nh, hd, w, tq, kw, seq_len):
    # q_ref: (tq, E) bf16  — current (batch, q-tile), all heads.
    # k_ref / v_ref: (S, E) bf16 — the whole sequence for the current batch.
    #   Their block index is constant along the q-tile grid axis, so they are
    #   DMA'd once per batch and stay resident (no 3x neighbour re-fetch).
    # o_ref: (tq, E) f32 — lane-dense row tile, written directly in the final
    #   (bsz, S, E) layout (no output relayout pass).
    i = pl.program_id(1)

    # Key/value window of kw rows covering the +-w band of this query tile
    # (tiles i-1, i, i+1, clipped to the sequence).
    start = jnp.clip((i - 1) * tq, 0, seq_len - kw)
    start = pl.multiple_of(start, 8)

    # Band bias, computed once per grid step and shared by every head.
    q_pos = i * tq + lax.broadcasted_iota(jnp.int32, (tq, kw), 0)
    k_pos = start + lax.broadcasted_iota(jnp.int32, (tq, kw), 1)
    bias = jnp.where(jnp.abs(q_pos - k_pos) <= w, 0.0, -1e30).astype(jnp.float32)

    for h in range(nh):                                   # static unroll
        c0, c1 = h * hd, (h + 1) * hd
        q_h = q_ref[:, c0:c1]                             # (tq, hd) bf16
        k_h = k_ref[pl.ds(start, kw), c0:c1]              # (kw, hd) bf16
        v_h = v_ref[pl.ds(start, kw), c0:c1]              # (kw, hd) bf16

        # Scores on the MXU in bf16 with f32 accumulation; contraction over the
        # head_dim (last dim of both operands) -> no transpose, no concat.
        s = lax.dot_general(q_h, k_h, (((1,), (1,)), ((), ())),
                            preferred_element_type=jnp.float32)
        s = s + bias

        # f32 softmax over the key window.  Every row contains its own diagonal,
        # so the row max is finite and masked entries underflow to exactly 0.
        m = jnp.max(s, axis=-1, keepdims=True)
        p = jnp.exp(s - m)
        l = jnp.sum(p, axis=-1, keepdims=True)
        p = (p * pl.reciprocal(l, approx=True)).astype(jnp.bfloat16)

        o_h = jnp.dot(p, v_h, preferred_element_type=jnp.float32)
        o_ref[:, c0:c1] = o_h.astype(o_ref.dtype)


def banded_sliding_window_attention(q, k, v, *, num_heads, head_dim, w,
                                    tq=None, out_dtype=jnp.float32):
    """q, k, v: (bsz, S, E) with E = num_heads * head_dim.  Band: |i - j| <= w."""
    bsz, s, e = q.shape
    assert e == num_heads * head_dim
    if tq is None:
        tq = _pick_q_tile(s, w)
    assert s % tq == 0 and (tq % 8 == 0 or tq == s)
    nq = s // tq
    kw = min(3 * tq, s)                     # clipped 3-tile key window
    assert tq >= w or kw == s, "query tile must cover the attention window"

    kern = functools.partial(_banded_attn_kernel, nh=num_heads, hd=head_dim,
                             w=w, tq=tq, kw=kw, seq_len=s)

    q_spec = pl.BlockSpec((None, tq, e), lambda b, i: (b, i, 0))
    kv_spec = pl.BlockSpec((None, s, e), lambda b, i: (b, 0, 0))  # resident/batch
    o_spec = pl.BlockSpec((None, tq, e), lambda b, i: (b, i, 0))

    block_bytes = (tq * e * 2) + 2 * (s * e * 2) + (tq * e * 4) \
        + 4 * (tq * kw * 4)

    return pl.pallas_call(
        kern,
        out_shape=jax.ShapeDtypeStruct((bsz, s, e), out_dtype),
        grid=(bsz, nq),
        in_specs=[q_spec, kv_spec, kv_spec],
        out_specs=o_spec,
        compiler_params=_compiler_params(("parallel", "arbitrary"), block_bytes),
    )(q, k, v)


# --------------------------- module forward ---------------------------------
def longformer_self_attention_forward(hidden_states, params, cfg, *, tq=None):
    """attention_mask=None path of LongformerSelfAttention.forward."""
    bsz, seq_len, embed_dim = hidden_states.shape
    nh = cfg.num_heads
    hd = embed_dim // nh
    w = cfg.attention_window
    assert embed_dim == cfg.num_hiddens
    assert seq_len % (2 * w) == 0            # sliding_chunks requirement

    # Fold 1/sqrt(head_dim) into the static query weights/bias and fuse the
    # three projections into one pre-transposed (E, 3E) bf16 matmul.
    scale = 1.0 / math.sqrt(hd)
    w_qkv = jnp.concatenate(
        [params["q_w"].T * scale, params["k_w"].T, params["v_w"].T],
        axis=1).astype(jnp.bfloat16)
    b_qkv = jnp.concatenate(
        [params["q_b"] * scale, params["k_b"], params["v_b"]],
        axis=0).astype(jnp.float32).reshape(1, -1)

    q, k, v = fused_qkv_projection(hidden_states, w_qkv, b_qkv)   # (B,S,E) bf16

    context_layer = banded_sliding_window_attention(
        q, k, v, num_heads=nh, head_dim=hd, w=w, tq=tq,
        out_dtype=hidden_states.dtype)
    return (context_layer,)


# --------------------------- pure-JAX reference ------------------------------
def reference_forward(hidden_states, params, cfg):
    bsz, s_len, e = hidden_states.shape
    nh = cfg.num_heads
    hd = e // nh
    w = cfg.attention_window
    hp = jax.lax.Precision.HIGHEST
    x = hidden_states
    q = (jnp.einsum("bse,oe->bso", x, params["q_w"], precision=hp)
         + params["q_b"]) / math.sqrt(hd)
    k = jnp.einsum("bse,oe->bso", x, params["k_w"], precision=hp) + params["k_b"]
    v = jnp.einsum("bse,oe->bso", x, params["v_w"], precision=hp) + params["v_b"]
    q = q.reshape(bsz, s_len, nh, hd)
    k = k.reshape(bsz, s_len, nh, hd)
    v = v.reshape(bsz, s_len, nh, hd)
    scores = jnp.einsum("bihd,bjhd->bhij", q, k, precision=hp)
    i = jnp.arange(s_len)[:, None]
    j = jnp.arange(s_len)[None, :]
    band = jnp.abs(i - j) <= w
    scores = jnp.where(band[None, None], scores, -jnp.inf)
    probs = jax.nn.softmax(scores, axis=-1)
    out = jnp.einsum("bhij,bjhd->bihd", probs, v, precision=hp)
    return out.reshape(bsz, s_len, e)


# ------------------------------- main ----------------------------------------
if __name__ == "__main__":
    cfg = Config()
    bsz, seq_len = 2, 32
    E = cfg.num_hiddens

    key = jax.random.PRNGKey(0)
    keys = jax.random.split(key, 8)

    def init_w(k):
        return (0.02 * jax.random.normal(k, (E, E))).astype(jnp.float32)

    # All six Linear layers from __init__ (only q/k/v are used when
    # attention_mask is None, matching the PyTorch forward).
    params = {
        "q_w": init_w(keys[0]), "q_b": jnp.zeros((E,), jnp.float32),
        "k_w": init_w(keys[1]), "k_b": jnp.zeros((E,), jnp.float32),
        "v_w": init_w(keys[2]), "v_b": jnp.zeros((E,), jnp.float32),
        "qg_w": init_w(keys[3]), "qg_b": jnp.zeros((E,), jnp.float32),
        "kg_w": init_w(keys[4]), "kg_b": jnp.zeros((E,), jnp.float32),
        "vg_w": init_w(keys[5]), "vg_b": jnp.zeros((E,), jnp.float32),
    }

    hidden_states = jax.random.normal(keys[6], (bsz, seq_len, E),
                                      dtype=jnp.float32)

    # tq=8 exercises the multi-tile banded path (clipped key windows at both
    # sequence edges, resident K/V reuse across q-tiles, per-head loop).
    (context_layer,) = longformer_self_attention_forward(
        hidden_states, params, cfg, tq=8)
    context_layer = jax.block_until_ready(context_layer)

    ref = reference_forward(hidden_states, params, cfg)
    assert context_layer.shape == (bsz, seq_len, E)
    assert bool(jnp.all(jnp.isfinite(context_layer)))
    assert bool(jnp.allclose(context_layer, ref, atol=1e-2, rtol=1e-2))

    print("KERNEL_OK")
</pallas_src>

<mosaic_0001>
module attributes {stable_mosaic.version = 11 : i64} {
  func.func @_qkv_kernel(%arg0: i32, %arg1: i32, %arg2: memref<1x32x32xf32, #tpu.memory_space<vmem>>, %arg3: memref<32x96xbf16, #tpu.memory_space<vmem>>, %arg4: memref<1x96xf32, #tpu.memory_space<vmem>>, %arg5: memref<1x32x32xbf16, #tpu.memory_space<vmem>>, %arg6: memref<1x32x32xbf16, #tpu.memory_space<vmem>>, %arg7: memref<1x32x32xbf16, #tpu.memory_space<vmem>>) attributes {dimension_semantics = [#tpu.dimension_semantics<parallel>, #tpu.dimension_semantics<parallel>], iteration_bounds = array<i64: 2, 1>, scalar_prefetch = 0 : i64, scratch_operands = 0 : i64, tpu.core_type = #tpu.core_type<tc>, window_params = [{transform_indices = @transform_0, window_bounds = array<i64: 1, 32, 32>}, {pipeline_mode = #tpu.pipeline_mode<synchronous>, transform_indices = @transform_1, window_bounds = array<i64: 32, 96>}, {pipeline_mode = #tpu.pipeline_mode<synchronous>, transform_indices = @transform_2, window_bounds = array<i64: 1, 96>}, {transform_indices = @transform_3, window_bounds = array<i64: 1, 32, 32>}, {transform_indices = @transform_4, window_bounds = array<i64: 1, 32, 32>}, {transform_indices = @transform_5, window_bounds = array<i64: 1, 32, 32>}]} {
    %c0 = arith.constant 0 : index
    %c0_0 = arith.constant 0 : index
    %c0_1 = arith.constant 0 : index
    %0 = vector.load %arg2[%c0, %c0_0, %c0_1] : memref<1x32x32xf32, #tpu.memory_space<vmem>>, vector<1x32x32xf32>
    %1 = vector.shape_cast %0 : vector<1x32x32xf32> to vector<32x32xf32>
    %2 = arith.truncf %1 : vector<32x32xf32> to vector<32x32xbf16>
    %c0_2 = arith.constant 0 : index
    %c0_3 = arith.constant 0 : index
    %3 = vector.load %arg3[%c0_2, %c0_3] : memref<32x96xbf16, #tpu.memory_space<vmem>>, vector<32x96xbf16>
    %cst = arith.constant dense<0.000000e+00> : vector<32x96xf32>
    %4 = tpu.matmul %2, %3, %cst {dimension_numbers = #tpu.dot_dimension_numbers<[1], [0], [0], [1], [0, 0, 1, 1], [], []>} : vector<32x32xbf16>, vector<32x96xbf16>, vector<32x96xf32> -> vector<32x96xf32>
    %c0_4 = arith.constant 0 : index
    %c0_5 = arith.constant 0 : index
    %5 = vector.load %arg4[%c0_4, %c0_5] : memref<1x96xf32, #tpu.memory_space<vmem>>, vector<1x96xf32>
    %6 = vector.broadcast %5 : vector<1x96xf32> to vector<32x96xf32>
    %7 = arith.addf %4, %6 : vector<32x96xf32>
    %8 = vector.extract_strided_slice %7 {offsets = [0, 0], sizes = [32, 32], strides = [1, 1]} : vector<32x96xf32> to vector<32x32xf32>
    %9 = arith.truncf %8 : vector<32x32xf32> to vector<32x32xbf16>
    %c0_6 = arith.constant 0 : index
    %c0_7 = arith.constant 0 : index
    %c0_8 = arith.constant 0 : index
    %10 = vector.load %arg5[%c0_6, %c0_7, %c0_8] : memref<1x32x32xbf16, #tpu.memory_space<vmem>>, vector<1x32x32xbf16>
    %11 = vector.shape_cast %10 : vector<1x32x32xbf16> to vector<32x32xbf16>
    %12 = vector.shape_cast %9 : vector<32x32xbf16> to vector<1x32x32xbf16>
    tpu.vector_store %arg5[%c0_6, %c0_7, %c0_8], %12 {strides = array<i32>} : memref<1x32x32xbf16, #tpu.memory_space<vmem>>, vector<1x32x32xbf16>,
    %13 = vector.extract_strided_slice %7 {offsets = [0, 32], sizes = [32, 32], strides = [1, 1]} : vector<32x96xf32> to vector<32x32xf32>
    %14 = arith.truncf %13 : vector<32x32xf32> to vector<32x32xbf16>
    %c0_9 = arith.constant 0 : index
    %c0_10 = arith.constant 0 : index
    %c0_11 = arith.constant 0 : index
    %15 = vector.load %arg6[%c0_9, %c0_10, %c0_11] : memref<1x32x32xbf16, #tpu.memory_space<vmem>>, vector<1x32x32xbf16>
    %16 = vector.shape_cast %15 : vector<1x32x32xbf16> to vector<32x32xbf16>
    %17 = vector.shape_cast %14 : vector<32x32xbf16> to vector<1x32x32xbf16>
    tpu.vector_store %arg6[%c0_9, %c0_10, %c0_11], %17 {strides = array<i32>} : memref<1x32x32xbf16, #tpu.memory_space<vmem>>, vector<1x32x32xbf16>,
    %18 = vector.extract_strided_slice %7 {offsets = [0, 64], sizes = [32, 32], strides = [1, 1]} : vector<32x96xf32> to vector<32x32xf32>
    %19 = arith.truncf %18 : vector<32x32xf32> to vector<32x32xbf16>
    %c0_12 = arith.constant 0 : index
    %c0_13 = arith.constant 0 : index
    %c0_14 = arith.constant 0 : index
    %20 = vector.load %arg7[%c0_12, %c0_13, %c0_14] : memref<1x32x32xbf16, #tpu.memory_space<vmem>>, vector<1x32x32xbf16>
    %21 = vector.shape_cast %20 : vector<1x32x32xbf16> to vector<32x32xbf16>
    %22 = vector.shape_cast %19 : vector<32x32xbf16> to vector<1x32x32xbf16>
    tpu.vector_store %arg7[%c0_12, %c0_13, %c0_14], %22 {strides = array<i32>} : memref<1x32x32xbf16, #tpu.memory_space<vmem>>, vector<1x32x32xbf16>,
    return
  }
  func.func @transform_0(%arg0: i32, %arg1: i32) -> (i32, i32, i32) {
    %c0_i32 = arith.constant 0 : i32
    %c0_i32_0 = arith.constant 0 : i32
    return %arg0, %arg1, %c0_i32 : i32, i32, i32
  }
  func.func @transform_1(%arg0: i32, %arg1: i32) -> (i32, i32) {
    %c0_i32 = arith.constant 0 : i32
    %c0_i32_0 = arith.constant 0 : i32
    %c0_i32_1 = arith.constant 0 : i32
    return %c0_i32, %c0_i32_0 : i32, i32
  }
  func.func @transform_2(%arg0: i32, %arg1: i32) -> (i32, i32) {
    %c0_i32 = arith.constant 0 : i32
    %c0_i32_0 = arith.constant 0 : i32
    %c0_i32_1 = arith.constant 0 : i32
    return %c0_i32, %c0_i32_0 : i32, i32
  }
  func.func @transform_3(%arg0: i32, %arg1: i32) -> (i32, i32, i32) {
    %c0_i32 = arith.constant 0 : i32
    %c0_i32_0 = arith.constant 0 : i32
    return %arg0, %arg1, %c0_i32 : i32, i32, i32
  }
  func.func @transform_4(%arg0: i32, %arg1: i32) -> (i32, i32, i32) {
    %c0_i32 = arith.constant 0 : i32
    %c0_i32_0 = arith.constant 0 : i32
    return %arg0, %arg1, %c0_i32 : i32, i32, i32
  }
  func.func @transform_5(%arg0: i32, %arg1: i32) -> (i32, i32, i32) {
    %c0_i32 = arith.constant 0 : i32
    %c0_i32_0 = arith.constant 0 : i32
    return %arg0, %arg1, %c0_i32 : i32, i32, i32
  }
}

</mosaic_0001>

<bundles_post_ra>
// kernel: tpu_custom_call.1
= control target key start
LH: loop header
LB: loop body
LE: loop exit
PB: predicated region body
PF: predicated region fallthrough
CT: control target
= control target key end

     0   :  { %11 = vsyncpa [#allocation3], 0  ;;  %s1393_s0 = inlined_call_operand.hbm [shape: f32[2,32,32], index: 0, kind: input, shape index: {}]   ;;  %s1394_s1 = inlined_call_operand.hbm [shape: bf16[32,96], index: 1, kind: input, shape index: {}]   ;;  %s1395_s2 = inlined_call_operand.vmem [shape: f32[1,96], index: 2, kind: input, shape index: {}]   ;;  %s1396_s3 = inlined_call_operand.hbm [shape: bf16[2,32,32], index: 3, kind: output, shape index: {0}]   ;;  %s1397_s4 = inlined_call_operand.hbm [shape: bf16[2,32,32], index: 4, kind: output, shape index: {1}]   ;;  %s1398_s5 = inlined_call_operand.hbm [shape: bf16[2,32,32], index: 5, kind: output, shape index: {2}]  }
   0x1   :  { %13 = vsyncpa [#allocation3 + $0x1], 0 }
   0x2   :  { %14 = vsyncpa [#allocation6], 0 }
   0x3   :  { %15 = vsyncpa [#allocation4], 0 }
   0x4   :  { %17 = vsyncpa [#allocation4 + $0x1], 0 }
   0x5   :  { %18 = vsyncpa [#allocation9], 0 }
   0x6   :  { %20 = vsyncpa [#allocation9 + $0x1], 0  ;;  %s1061_s18 = smov 0   ;;  %s1063_s19 = smov 0  }
   0x7   :  { %s1065_s20 = smov 0   ;;  %s1067_s21 = smov 0  }
   0x8   :  { %s1069_s22 = smov 0   ;;  %s1071_s23 = smov 0  }
   0x9 LB: > { %s1092_s24 = sadd.s32 4294967295, %s1017_s23   ;;  %s1402_s25 = sadd.s32 4294967294, %s1017_s23   ;;  %s1017_s23 = sphi %s1071_s23, %s26_s23   ;;  %s1013_s22 = sphi %s1069_s22, %s1424_s22   ;;  %s1009_s21 = sphi %s1067_s21, %s1423_s21   ;;  %s1005_s20 = sphi %s1065_s20, %s1422_s20   ;;  %s1001_s19 = sphi %s1063_s19, %s1421_s19   ;;  %s997_s18 = sphi %s1061_s18, %s1420_s18  }
   0xa   : > { %p60_p0 = scmp.ne.s32.totalorder %s1001_s19, %s997_s18  ;;  %p1399_p1 = scmp.eq.s32.totalorder %s1092_s24, 0 }
   0xb   : > { %p134_p3 = scmp.eq.s32.totalorder %s1402_s25, 1  ;;  %p669_p5 = scmp.ge.s32.totalorder %s1017_s23, 1 }
   0xc   : > { %p1103_p4 = por %p1399_p1, %p60_p0  ;;  %p197_p7 = scmp.lt.s32.totalorder %s1017_s23, 3 }
   0xd   : > { %p1108_p6 = por %p134_p3, %p60_p0  ;;  %s1019_s29 = smov [#allocation5]  }
   0xe   : > { %s1404_s26 = scalar_select %p1103_p4, 1, 0 }
   0xf   : > { %s1405_s27 = scalar_select %p1108_p6, 1, 0 }
  0x10   : > { %p1113_p8 = pnand %p669_p5, %p197_p7  ;;  %s209_s30 = sshll.u32 %s1019_s29, 4  ;;  %s210_s30 = int_to_ptr.vmem [resolvable:$true] %s209_s30 }
  0x11   : > { %s38_s7 = sadd.s32 1, %s1013_s22  ;;  %s813_s10 = scalar_lea.hbm %s1394_s1, 256 }
  0x12   : > { %s1406_s28 = scalar_select %p1113_p8, 1, 0 }
  0x13   : > { %p733_p9 = pneg %p1113_p8  ;;  %p814_p12 = scmp.ne.s32.totalorder %s1394_s1, %s813_s10 }
  0x14   : > { %p820_p5 = scmp.lt.u32.totalorder %s813_s10, %s1394_s1 }
  0x15   : > { %p1122_p11 = pnand %p733_p9, %p1399_p1 }
  0x17   : > { %p815_p13 = pneg %p1122_p11 }
  0x19   : > { %p816_p0 = pnand %p815_p13, %p814_p12 }
  0x1b   : > { %p817_p3 = pneg %p816_p0 }
  0x1d   : > { %p822_p7 = pnand %p820_p5, %p817_p3 }
  0x1f   : > { %825 = shalt.err (!%p822_p7)
}
  0x20   : > { %s826_s15 = scalar_lea.vmem %s210_s30, 256  ;;  %p834_p2 = scmp.lt.s32.totalorder %s210_s30, %s210_s30 }
  0x21   : > { %p827_p9 = scmp.ne.s32.totalorder %s210_s30, %s826_s15  ;;  %p835_p6 = scmp.lt.s32.totalorder %s826_s15, %s826_s15 }
  0x23   : > { %p829_p10 = pnand %p827_p9, %p815_p13  ;;  %p836_p4 = por %p835_p6, %p834_p2 }
  0x25   : > { %p830_p1 = pneg %p829_p10 }
  0x27   : > { %p837_p8 = pnand %p836_p4, %p830_p1 }
  0x29   : > { %840 = shalt.err (!%p837_p8)
}
  0x2a   : > { %s1020_s16 = smov 64   ;;  %s1021_s17 = smov 4  }
  0x2b   : > { %736 = dma.hbm_to_vmem [thread:$0]  (!%p1122_p11), %s1394_s1, 256, %s210_s30, [#allocation6], %s1020_s16, %s1020_s16, %s1021_s17  }
  0x2c   : > { %p40_p1 = scmp.ge.s32.totalorder %s38_s7, 2  ;;  %s47_s9 = sadd.s32 1, %s1005_s20 }
  0x2d   : > { %p54_p2 = scmp.ne.s32.totalorder %s1005_s20, %s1001_s19  ;;  %p55_p4 = scmp.eq.s32.totalorder %s1017_s23, 0 }
  0x2e   : > { %s1426_s7 = smov (%p40_p1, %s38_s7), 0  ;;  %p1409_p8 = scmp.eq.s32.totalorder %s1092_s24, 1 }
  0x2f   : > { %p1149_p6 = por %p55_p4, %p54_p2  ;;  %s42_s6 = ssub.s32 %s1013_s22, %s1426_s7 }
  0x30   : > { %p1155_p10 = por %p1409_p8, %p54_p2  ;;  %p752_p12 = scmp.lt.s32.totalorder %s1017_s23, 2 }
  0x31   : > { %p45_p11 = scmp.eq.s32.totalorder %s42_s6, 0  ;;  %s226_s30 = sand.u32 1, %s1005_s20  }
  0x32   : > { %s672_s12 = sshll.u32 %s226_s30, 5  ;;  %s701_s14 = sshll.u32 %s1013_s22, 9 }
  0x33   : > { %s1164_s13 = scalar_select %p45_p11, %s1005_s20, %s47_s9  }
  0x34   : > { %s1170_s17 = scalar_lea.hbm %s1393_s0, %s701_s14  ;;  %s230_s29 = scalar_lea.vmem [#allocation2], %s672_s12 }
  0x35   : > { %s239_s8 = sshll.u32 %s230_s29, 4  ;;  %p1176_p13 = pnand %p752_p12, %p1149_p6  ;;  %s1172_s8 = int_to_ptr.vmem [resolvable:$true] %s239_s8 }
  0x36   : > { %s1180_s9 = scalar_lea.sflag [#allocation3], %s226_s30  ;;  %s841_s15 = scalar_lea.hbm %s1170_s17, 512 }
  0x37   : > { %p842_p0 = scmp.ne.s32.totalorder %s1170_s17, %s841_s15  ;;  %p843_p3 = pneg %p1176_p13 }
  0x38   : > { %s846_s10 = scalar_lea.hbm %s1393_s0, 1024  ;;  %p847_p9 = scmp.lt.u32.totalorder %s1170_s17, %s1393_s0 }
  0x39   : > { %p844_p5 = pnand %p843_p3, %p842_p0  ;;  %p848_p1 = scmp.lt.u32.totalorder %s846_s10, %s841_s15 }
  0x3a   : > { %p850_p4 = scmp.lt.u32.totalorder %s841_s15, %s1170_s17 }
  0x3b   : > { %p845_p7 = pneg %p844_p5  ;;  %p849_p2 = por %p848_p1, %p847_p9 }
  0x3d   : > { %p851_p6 = por %p850_p4, %p849_p2 }
  0x3f   : > { %p852_p8 = pnand %p851_p6, %p845_p7 }
  0x41   : > { %855 = shalt.err (!%p852_p8)
}
  0x42   : > { %s856_s30 = scalar_lea.vmem %s1172_s8, 512  ;;  %s1022_s12 = smov [#allocation2]  }
  0x43   : > { %p857_p12 = scmp.ne.s32.totalorder %s1172_s8, %s856_s30  ;;  %s861_s14 = sshll.u32 %s1022_s12, 4  ;;  %s862_s14 = int_to_ptr.vmem [resolvable:$false] %s861_s14 }
  0x44   : > { %s863_s16 = scalar_lea.vmem %s862_s14, 1024  ;;  %p864_p5 = scmp.lt.s32.totalorder %s1172_s8, %s862_s14 }
  0x45   : > { %p859_p11 = pnand %p857_p12, %p843_p3  ;;  %p865_p9 = scmp.lt.s32.totalorder %s863_s16, %s856_s30 }
  0x47   : > { %p860_p0 = pneg %p859_p11  ;;  %p866_p1 = por %p865_p9, %p864_p5 }
  0x49   : > { %p867_p2 = pnand %p866_p1, %p860_p0 }
  0x4b   : > { %870 = shalt.err (!%p867_p2)
}
  0x4c   : > { %s1023_s15 = smov 128   ;;  %s1024_s10 = smov 8  }
  0x4d   : > { %740 = dma.hbm_to_vmem [thread:$0]  (!%p1176_p13), %s1170_s17, 512, %s1172_s8, %s1180_s9, %s1023_s15, %s1023_s15, %s1024_s10  }
  0x4e   : > { %p1412_p3 = scmp.ne.s32.totalorder %s1406_s28, 0 }
  0x4f   : > { %s1211_s29 = sand.u32 (!%p1412_p3), 1, %s1001_s19   ;;  %p1413_p7 = scmp.ne.s32.totalorder (!%p1412_p3), %s1404_s26, 0 }
  0x50   : > { %251 = sbr.rel (%p1412_p3) target bundleno = 492 (0x1ec), region = 32  ;;  %s676_s30 = sshll.u32 (!%p1412_p3), %s1211_s29, 5 }
  0x51   : > { %s254_s12 = scalar_lea.sflag (!%p1412_p3), [#allocation3], %s1211_s29  ;;  %s257_s14 = scalar_lea.vmem (!%p1412_p3), [#allocation2], %s676_s30 }
  0x57   : > { %980 = dma.done.wait (%p1413_p7), %s254_s12, 512  }
  0x58   : > { %982 = vsyncadd (%p1413_p7), %s254_s12, 4294966784  ;;  %p1414_p4 = scmp.eq.s32.totalorder %s1092_s24, 0 }
  0x5a   : > { %984 = dma.done.wait (%p1414_p4), [#allocation6], 256   ;;  %p1415_p13 = pmov %p1414_p4 }
  0x5b   : > { %v811_v0 = vld [vmem:[#allocation5] sm:$0xff]   ;;  %v812_v1 = vld [vmem:[#allocation5 + $0x8] sm:$0xff]   ;;  %vm332_vm0 = vcmask 261120   ;;  %v305_v5 = vld [vmem:[%s257_s14 + $0x10] sm:$0xff]  ;;  %s1227_s17 = sshll.u32 %s1211_s29, 4  ;;  %vm404_vm1 = vcmask 257024  }
  0x5c   : > { %986 = vsyncadd (%p1415_p13), [#allocation6], 4294967040  ;;  %713 = vmatprep.subr.bf16.mxu0 %v811_v0  ;;  %v303_v2 = vld [vmem:[%s257_s14] sm:$0xff]  ;;  %v304_v3 = vld [vmem:[%s257_s14 + $0x8] sm:$0xff]  ;;  %s283_s8 = scalar_lea.vmem [#allocation7], %s1227_s17  ;;  %s1403_s9 = smov 96  }
  0x5d   : > { %714 = vmatpush3.bf16.msra.mxu0 %v811_v0  ;;  %v307_v4 = vpack.c.bf16 %v304_v3, %v303_v2  ;;  %v306_v6 = vld [vmem:[%s257_s14 + $0x18] sm:$0xff]  ;;  %v681_v8 = vld [vmem:[%s1395_s2] ss:$0 sm:$0xff]  ;;  %s467_s6 = sshll.u32 %s283_s8, 4  ;;  %s1233_s16 = sshll.u32 %s1009_s21, 8  ;;  %s1235_s6 = int_to_ptr.vmem [resolvable:$true] %s467_s6 }
  0x5e   : > { %715 = vmatprep.subr.bf16.mxu0 %v812_v1  ;;  %v308_v7 = vpack.c.bf16 %v306_v6, %v305_v5  ;;  %s1245_s21 = scalar_lea.hbm %s1396_s3, %s1233_s16  ;;  %s1026_s30 = smov 64  }
  0x5f   : > { %717 = vmatprep.mubr.msk.bf16.mxu0 %vm332_vm0, %v307_v4  ;;  %s442_s12 = scalar_lea.sflag [#allocation4], %s1211_s29  ;;  %s871_s14 = scalar_lea.vmem %s1235_s6, 256 }
  0x60   : > { %p872_p6 = scmp.ne.s32.totalorder %s1235_s6, %s871_s14  ;;  %s1027_s26 = smov [#allocation7]  }
  0x61   : > { %716 = vmatpush3.bf16.msra.mxu0 %v812_v1  ;;  %s875_s28 = sshll.u32 %s1027_s26, 4  ;;  %s876_s28 = int_to_ptr.vmem [resolvable:$false] %s875_s28 }
  0x62   : > { %p873_p8 = pnand %p872_p6, %p1155_p10  ;;  %p878_p11 = scmp.lt.s32.totalorder %s1235_s6, %s876_s28 }
  0x64   : > { %718 = vmatmul.mubr.msk.bf16.vlgmr.msra.gmra.mrb[0].mxu0 %vm332_vm0, %v308_v7  ;;  %p874_p12 = pneg %p873_p8 }
 0x137   : > { %v719_v9 = vpop.f32.mrb[0].mxu0 }
 0x138   : > { %v382_v10 = vadd.f32 %v719_v9, %v681_v8  ;;  %v373_v11 = vpop.f32.mrb[1].mxu0 }
 0x139   : > { %v374_v12 = vadd.f32 %v681_v8, %v373_v11  ;;  %v720_v13 = vpop.f32.mrb[2].mxu0 }
 0x13a   : > { %v704_v14 = vpack.c.bf16 %v382_v10, %v382_v10  ;;  %v385_v15 = vadd.f32 %v720_v13, %v681_v8  ;;  %v376_v16 = vpop.f32.mrb[3].mxu0 }
 0x13b   : > { %v702_v17 = vpack.c.bf16 %v374_v12, %v374_v12  ;;  %v377_v18 = vadd.f32 %v681_v8, %v376_v16 }
 0x13c   : > { %407 = vst.msk [vmem:[%s283_s8 + $0x8] sm:$0xf] %vm404_vm1, %v704_v14  ;;  %v705_v19 = vpack.c.bf16 %v385_v15, %v385_v15  ;;  %413 = vrot.lane.b32.xlu1 %v704_v14, %s1403_s9 }
 0x13d   : > { %405 = vst.msk [vmem:[%s283_s8] sm:$0xf] %vm404_vm1, %v702_v17  ;;  %v703_v20 = vpack.c.bf16 %v377_v18, %v377_v18  ;;  %409 = vrot.lane.b32.xlu0 %v702_v17, %s1403_s9 }
 0x13e   : > { %408 = vst.msk [vmem:[%s283_s8 + $0xc] sm:$0xf] %vm404_vm1, %v705_v19 }
 0x13f   : > { %406 = vst.msk [vmem:[%s283_s8 + $0x4] sm:$0xf] %vm404_vm1, %v703_v20  ;;  %s877_s8 = scalar_lea.vmem %s876_s28, 512 }
 0x140   : > { %415 = vrot.lane.b32.xlu1 %v705_v19, %s1403_s9  ;;  %p879_p0 = scmp.lt.s32.totalorder %s877_s8, %s871_s14 }
 0x141   : > { %425 = vrot.lane.b32.xlu0 %v702_v17, %s1026_s30 }
 0x142   : > { %p880_p5 = por %p879_p0, %p878_p11 }
 0x144   : > { %p881_p9 = pnand %p880_p5, %p874_p12 }
 0x146   : > { %884 = shalt.err (!%p881_p9)
}
 0x147   : > { %s885_s15 = scalar_lea.hbm %s1245_s21, 256  ;;  %s889_s26 = scalar_lea.hbm %s1396_s3, 512 }
 0x148   : > { %p886_p1 = scmp.ne.s32.totalorder %s1245_s21, %s885_s15  ;;  %p890_p7 = scmp.lt.u32.totalorder %s1245_s21, %s1396_s3 }
 0x149   : > { %p891_p4 = scmp.lt.u32.totalorder %s889_s26, %s885_s15  ;;  %p893_p6 = scmp.lt.u32.totalorder %s885_s15, %s1245_s21 }
 0x14a   : > { %p887_p2 = pnand %p886_p1, %p1155_p10 }
 0x14b   : > { %p892_p13 = por %p891_p4, %p890_p7 }
 0x14c   : > { %p888_p3 = pneg %p887_p2 }
 0x14d   : > { %p894_p8 = por %p893_p6, %p892_p13 }
 0x14f   : > { %p895_p12 = pnand %p894_p8, %p888_p3 }
 0x151   : > { %898 = shalt.err (!%p895_p12)
}
 0x152   : > { %s1028_s14 = smov 4   ;;  %427 = vrot.lane.b32.xlu1 %v703_v20, %s1026_s30  ;;  %s1416_s25 = smov 96  }
 0x153   : > { %727 = dma.vmem_to_hbm [thread:$0]  (%p1155_p10), %s1235_s6, 256, %s1245_s21, %s442_s12, %s1026_s30, %s1026_s30, %s1028_s14  }
 0x154   : > { %411 = vrot.lane.b32.xlu0 %v703_v20, %s1416_s25  ;;  %s290_s9 = scalar_lea.vmem [#allocation8], %s1227_s17  ;;  %s446_s6 = sand.u32 1, %s1092_s24  }
 0x155   : > { %s485_s29 = sshll.u32 %s290_s9, 4  ;;  %s1286_s21 = scalar_lea.vmem [#allocation10], %s1227_s17  ;;  %s1290_s29 = int_to_ptr.vmem [resolvable:$true] %s485_s29 }
 0x156   : > { %431 = vrot.lane.b32.xlu1 %v705_v19, %s1026_s30  ;;  %s1296_s15 = scalar_lea.hbm %s1397_s4, %s1233_s16  ;;  %s503_s10 = sshll.u32 %s1286_s21, 4  ;;  %s1331_s10 = int_to_ptr.vmem [resolvable:$true] %s503_s10 }
 0x157   : > { %s1302_s24 = scalar_lea.sflag [#allocation9], %s446_s6  ;;  %s899_s17 = scalar_lea.vmem %s1290_s29, 256 }
 0x158   : > { %429 = vrot.lane.b32.xlu0 %v704_v14, %s1026_s30  ;;  %p900_p11 = scmp.ne.s32.totalorder %s1290_s29, %s899_s17  ;;  %s1029_s26 = smov [#allocation8]  }
 0x159   : > { %s903_s28 = sshll.u32 %s1029_s26, 4  ;;  %s904_s28 = int_to_ptr.vmem [resolvable:$false] %s903_s28 }
 0x15a   : > { %p901_p0 = pnand %p900_p11, %p1155_p10  ;;  %s905_s25 = scalar_lea.vmem %s904_s28, 512 }
 0x15b   : > { %p906_p9 = scmp.lt.s32.totalorder %s1290_s29, %s904_s28  ;;  %p907_p1 = scmp.lt.s32.totalorder %s905_s25, %s899_s17 }
 0x15c   : > { %p902_p5 = pneg %p901_p0 }
 0x15d   : > { %p908_p2 = por %p907_p1, %p906_p9 }
 0x15f   : > { %p909_p3 = pnand %p908_p2, %p902_p5 }
 0x1ae   : > { %v414_v21 = vpop.permute.xlu1 %413 }
 0x1af   : > { %423 = vst.msk [vmem:[%s290_s9 + $0x8] sm:$0xf] %vm404_vm1, %v414_v21  ;;  %v410_v22 = vpop.permute.xlu0 %409 }
 0x1b0   : > { %421 = vst.msk [vmem:[%s290_s9] sm:$0xf] %vm404_vm1, %v410_v22 }
 0x1b2   : > { %v416_v23 = vpop.permute.xlu1 %415 }
 0x1b3   : > { %424 = vst.msk [vmem:[%s290_s9 + $0xc] sm:$0xf] %vm404_vm1, %v416_v23  ;;  %v426_v24 = vpop.permute.xlu0 %425 }
 0x1b4   : > { %437 = vst.msk [vmem:[%s1286_s21] sm:$0xf] %vm404_vm1, %v426_v24 }
 0x1c4   : > { %v428_v25 = vpop.permute.xlu1 %427 }
 0x1c5   : > { %438 = vst.msk [vmem:[%s1286_s21 + $0x4] sm:$0xf] %vm404_vm1, %v428_v25 }
 0x1c6   : > { %v412_v26 = vpop.permute.xlu0 %411 }
 0x1c7   : > { %422 = vst.msk [vmem:[%s290_s9 + $0x4] sm:$0xf] %vm404_vm1, %v412_v26 }
 0x1c8   : > { %912 = shalt.err (!%p909_p3)
}
 0x1c9   : > { %s913_s9 = scalar_lea.hbm %s1296_s15, 256  ;;  %s917_s8 = scalar_lea.hbm %s1397_s4, 512 }
 0x1ca   : > { %p914_p7 = scmp.ne.s32.totalorder %s1296_s15, %s913_s9  ;;  %p918_p6 = scmp.lt.u32.totalorder %s1296_s15, %s1397_s4 }
 0x1cb   : > { %p919_p8 = scmp.lt.u32.totalorder %s917_s8, %s913_s9  ;;  %p921_p11 = scmp.lt.u32.totalorder %s913_s9, %s1296_s15 }
 0x1cc   : > { %p915_p4 = pnand %p914_p7, %p1155_p10 }
 0x1cd   : > { %p920_p12 = por %p919_p8, %p918_p6 }
 0x1ce   : > { %p916_p13 = pneg %p915_p4 }
 0x1cf   : > { %p922_p0 = por %p921_p11, %p920_p12 }
 0x1d1   : > { %p923_p5 = pnand %p922_p0, %p916_p13 }
 0x1d3   : > { %926 = shalt.err (!%p923_p5)
}
 0x1d4   : > { %728 = dma.vmem_to_hbm [thread:$0]  (%p1155_p10), %s1290_s29, 256, %s1296_s15, %s1302_s24, %s1026_s30, %s1026_s30, %s1028_s14   ;;  %v432_v27 = vpop.permute.xlu1 %431  ;;  %v430_v28 = vpop.permute.xlu0 %429 }
 0x1d5   : > { %s1337_s9 = scalar_lea.hbm %s1398_s5, %s1233_s16  ;;  %440 = vst.msk [vmem:[%s1286_s21 + $0xc] sm:$0xf] %vm404_vm1, %v432_v27  ;;  %439 = vst.msk [vmem:[%s1286_s21 + $0x8] sm:$0xf] %vm404_vm1, %v430_v28  ;;  %s927_s6 = scalar_lea.vmem %s1331_s10, 256 }
 0x1d6   : > { %p928_p9 = scmp.ne.s32.totalorder %s1331_s10, %s927_s6  ;;  %s1030_s29 = smov [#allocation10]  }
 0x1d7   : > { %s931_s15 = sshll.u32 %s1030_s29, 4  ;;  %s932_s15 = int_to_ptr.vmem [resolvable:$false] %s931_s15 }
 0x1d8   : > { %p929_p1 = pnand %p928_p9, %p1155_p10  ;;  %s933_s12 = scalar_lea.vmem %s932_s15, 512 }
 0x1d9   : > { %p934_p3 = scmp.lt.s32.totalorder %s1331_s10, %s932_s15  ;;  %p935_p7 = scmp.lt.s32.totalorder %s933_s12, %s927_s6 }
 0x1da   : > { %p930_p2 = pneg %p929_p1 }
 0x1db   : > { %p936_p4 = por %p935_p7, %p934_p3 }
 0x1dd   : > { %p937_p13 = pnand %p936_p4, %p930_p2 }
 0x1df   : > { %940 = shalt.err (!%p937_p13)
}
 0x1e0   : > { %s941_s16 = scalar_lea.hbm %s1337_s9, 256  ;;  %s945_s26 = scalar_lea.hbm %s1398_s5, 512 }
 0x1e1   : > { %p942_p6 = scmp.ne.s32.totalorder %s1337_s9, %s941_s16  ;;  %p946_p11 = scmp.lt.u32.totalorder %s1337_s9, %s1398_s5 }
 0x1e2   : > { %p947_p0 = scmp.lt.u32.totalorder %s945_s26, %s941_s16  ;;  %p949_p9 = scmp.lt.u32.totalorder %s941_s16, %s1337_s9 }
 0x1e3   : > { %p943_p8 = pnand %p942_p6, %p1155_p10 }
 0x1e4   : > { %p948_p5 = por %p947_p0, %p946_p11 }
 0x1e5   : > { %p944_p12 = pneg %p943_p8 }
 0x1e6   : > { %p950_p1 = por %p949_p9, %p948_p5 }
 0x1e8   : > { %p951_p2 = pnand %p950_p1, %p944_p12 }
 0x1ea   : > { %954 = shalt.err (!%p951_p2)
}
 0x1eb   : > { %729 = dma.vmem_to_hbm [thread:$0]  (%p1155_p10), %s1331_s10, 256, %s1337_s9, %s1302_s24, %s1026_s30, %s1026_s30, %s1028_s14  }
 0x1ec PF: > { %s518_s25 = sand.u32 1, %s997_s18   ;;  %p1417_p3 = scmp.ne.s32.totalorder %s1405_s27, 0 }
 0x1ed   : > { %p1418_p7 = scmp.ge.s32.totalorder %s1017_s23, 2  ;;  %s519_s6 = scalar_lea.sflag [#allocation4], %s518_s25 }
 0x1ef   : > { %p742_p4 = pnand %p1418_p7, %p1417_p3 }
 0x1f1   : > { %988 = dma.done.wait (!%p742_p4), %s519_s6, 256  }
 0x1f2   : > { %990 = vsyncadd (!%p742_p4), %s519_s6, 4294967040  ;;  %s1419_s11 = sadd.s32 4294967294, %s1017_s23  }
 0x1f3   : > { %s527_s29 = sand.u32 1, %s1419_s11  }
 0x1f4   : > { %s528_s15 = scalar_lea.sflag [#allocation9], %s527_s29 }
 0x1f5   : > { %992 = dma.done.wait (!%p742_p4), %s528_s15, 512  }
 0x1f6   : > { %994 = vsyncadd (!%p742_p4), %s528_s15, 4294966784  ;;  %s26_s23 = sadd.s32 1, %s1017_s23   ;;  %s1420_s18 = smov %s1001_s19 }
 0x1f7   : > { %p23_p10 = scmp.ge.s32.totalorder %s26_s23, 4   ;;  %s1421_s19 = smov %s1005_s20 }
 0x1f8   : > { %s1422_s20 = smov %s1164_s13  ;;  %s1423_s21 = smov %s1013_s22 }
 0x1f9   : > { %s1424_s22 = smov %s1426_s7  ;;  %25 = sbr.rel (!%p23_p10) target bundleno = 9 (0x9), region = 113 }
 0x200   :  { %542 = vsyncpa [#allocation3], 1 }
 0x201   :  { %544 = vsyncpa [#allocation3 + $0x1], 1 }
 0x202   :  { %545 = vsyncpa [#allocation6], 1 }
 0x203   :  { %546 = vsyncpa [#allocation4], 1 }
 0x204   :  { %548 = vsyncpa [#allocation4 + $0x1], 1 }
 0x205   :  { %549 = vsyncpa [#allocation9], 1 }
 0x206   :  { %551 = vsyncpa [#allocation9 + $0x1], 1 }

</bundles_post_ra>
